<compile_context>
chip_gen: v7x
topology: tpu7x:2x2x1
jax: 0.10.0
libtpu: 0.0.40
codegen_flags: <defaults>
</compile_context>

<pallas_src>
import functools
import math

import jax
import jax.numpy as jnp
from jax.experimental import pallas as pl
from jax.experimental.pallas import tpu as pltpu


def _round_up(x, m):
    return ((x + m - 1) // m) * m


def _dblock_kernel(x_ref, w12_ref, b12_ref, wout_ref, bout_ref, out_ref, *,
                   hidden_dim):
    # x tile: (tile_n, input_dim).  Transpose in VMEM so the row dimension
    # rides the 128 lanes for everything that follows.
    xt = x_ref[...].T                                     # (input_dim, tile_n)

    # [W1 ; 0.5*W2] @ x^T with f32 accumulation, f32 bias add.  Lane-dense.
    pre = jnp.dot(w12_ref[...], xt,
                  preferred_element_type=jnp.float32)     # (2*hidden, tile_n)
    pre = pre + b12_ref[...]                              # (2*hidden, 1) bcast

    # Gate: the 0.5 sigmoid-argument scale was folded into W2/b2 at prep time,
    # so sigmoid(z) = 0.5*tanh(pre2) + 0.5 and one tanh covers both halves.
    t = jnp.tanh(pre)
    h = t[:hidden_dim, :] * (0.5 * t[hidden_dim:, :] + 0.5)  # (hidden, tile_n)

    # [Wmu ; Wls] @ h -> fused (2*out, tile_n), still lane-dense.
    out = jnp.dot(wout_ref[...], h.astype(wout_ref.dtype),
                  preferred_element_type=jnp.float32)
    out = out + bout_ref[...]                              # (2*out, 1) bcast
    out_ref[...] = out.astype(out_ref.dtype)


def prepare_dblock_params(params, compute_dtype=jnp.float32):
    """One-time fusion of the four Linear layers into two stacked matrices.

    Returns (w12, b12, wout, bout):
      w12  : (2*hidden, input_dim) = [W1 ; 0.5*W2]   (sigmoid-as-tanh fold)
      b12  : (2*hidden, 1)         = [b1 ; 0.5*b2]
      wout : (2*out, hidden)       = [Wmu ; Wls]
      bout : (2*out, 1)            = [bmu ; bls]
    Weights cast to compute_dtype; biases stay f32 (added post-accumulation).
    """
    w1, b1, w2, b2, wmu, bmu, wls, bls = params
    w12 = jnp.concatenate([w1, 0.5 * w2], axis=0).astype(compute_dtype)
    b12 = jnp.concatenate([b1, 0.5 * b2]).reshape(-1, 1).astype(jnp.float32)
    wout = jnp.concatenate([wmu, wls], axis=0).astype(compute_dtype)
    bout = jnp.concatenate([bmu, bls]).reshape(-1, 1).astype(jnp.float32)
    return (w12, b12, wout, bout)


@functools.partial(jax.jit, static_argnames=("max_tile_n",))
def dblock_forward(x, prepared, *, max_tile_n=4096):
    """x: (..., input_dim).  Returns (mu, logsigma), each (..., output_dim)."""
    w12, b12, wout, bout = prepared
    two_hidden, input_dim = w12.shape
    hidden_dim = two_hidden // 2
    two_out = wout.shape[0]
    output_dim = two_out // 2
    compute_dtype = w12.dtype

    lead_shape = x.shape[:-1]
    n = math.prod(lead_shape) if lead_shape else 1
    out_dtype = x.dtype
    x2d = x.reshape(n, input_dim)
    if x2d.dtype != compute_dtype:
        # Ideally x already arrives in compute_dtype (or this cast fuses into
        # the producer); otherwise it costs one extra HBM pass over x.
        x2d = x2d.astype(compute_dtype)

    # Row tiling.  No wrapper padding: Pallas masks the ragged last block.
    # For n > 1024 always use >= 2 grid steps so the "parallel" row axis can
    # shard across both TensorCores on v7x.
    if n <= 1024:
        tile_n = n                               # single step, full-extent blocks
    else:
        tile_n = min(max_tile_n, _round_up((n + 1) // 2, 128))
    grid = (pl.cdiv(n, tile_n),)

    w_itemsize = jnp.dtype(compute_dtype).itemsize
    flops = 2 * n * (input_dim * two_hidden + hidden_dim * two_out)
    bytes_accessed = (
        n * input_dim * w_itemsize
        + n * two_out * jnp.dtype(out_dtype).itemsize
        + w12.size * w_itemsize + wout.size * w_itemsize
        + b12.size * 4 + bout.size * 4)

    fused_t = pl.pallas_call(
        functools.partial(_dblock_kernel, hidden_dim=hidden_dim),
        out_shape=jax.ShapeDtypeStruct((two_out, n), out_dtype),
        grid=grid,
        in_specs=[
            pl.BlockSpec((tile_n, input_dim), lambda i: (i, 0)),
            pl.BlockSpec((two_hidden, input_dim), lambda i: (0, 0)),
            pl.BlockSpec((two_hidden, 1), lambda i: (0, 0)),
            pl.BlockSpec((two_out, hidden_dim), lambda i: (0, 0)),
            pl.BlockSpec((two_out, 1), lambda i: (0, 0)),
        ],
        out_specs=pl.BlockSpec((two_out, tile_n), lambda i: (0, i)),
        compiler_params=pltpu.CompilerParams(
            dimension_semantics=("parallel",),
            vmem_limit_bytes=32 << 20,
        ),
        cost_estimate=pl.CostEstimate(
            flops=flops,
            transcendentals=n * two_hidden,
            bytes_accessed=bytes_accessed,
        ),
    )(x2d, w12, b12, wout, bout)

    # TODO(synk): if the consumer can take the fused (2*out, n) buffer
    # directly, skip this split/transpose (saves two extra XLA passes).
    mu = fused_t[:output_dim, :].T.reshape(*lead_shape, output_dim)
    logsigma = fused_t[output_dim:, :].T.reshape(*lead_shape, output_dim)
    return mu, logsigma


def init_dblock_params(key, input_dim, hidden_dim, output_dim):
    """Deterministic init mimicking nn.Linear's U(-1/sqrt(in), 1/sqrt(in))."""
    def linear(k, out_f, in_f):
        kw, kb = jax.random.split(k)
        bound = 1.0 / jnp.sqrt(in_f)
        w = jax.random.uniform(kw, (out_f, in_f), jnp.float32, -bound, bound)
        b = jax.random.uniform(kb, (out_f,), jnp.float32, -bound, bound)
        return w, b

    k1, k2, k3, k4 = jax.random.split(key, 4)
    w1, b1 = linear(k1, hidden_dim, input_dim)
    w2, b2 = linear(k2, hidden_dim, input_dim)
    wmu, bmu = linear(k3, output_dim, hidden_dim)
    wls, bls = linear(k4, output_dim, hidden_dim)
    return (w1, b1, w2, b2, wmu, bmu, wls, bls)


def dblock_reference(x, params):
    w1, b1, w2, b2, wmu, bmu, wls, bls = params
    h = jnp.tanh(x @ w1.T + b1) * jax.nn.sigmoid(x @ w2.T + b2)
    return h @ wmu.T + bmu, h @ wls.T + bls


if __name__ == "__main__":
    key = jax.random.PRNGKey(0)
    k_param, k_x1, k_x2 = jax.random.split(key, 3)

    input_dim, hidden_dim, output_dim = 32, 64, 16
    params = init_dblock_params(k_param, input_dim, hidden_dim, output_dim)
    prepared_f32 = prepare_dblock_params(params, compute_dtype=jnp.float32)

    # Test 1: small (batch, seq) input -> single grid step, f32 path.
    x = jax.random.normal(k_x1, (2, 8, input_dim), jnp.float32)
    mu, logsigma = dblock_forward(x, prepared_f32)
    jax.block_until_ready((mu, logsigma))
    mu_ref, ls_ref = dblock_reference(x, params)
    assert mu.shape == (2, 8, output_dim)
    assert logsigma.shape == (2, 8, output_dim)
    assert jnp.allclose(mu, mu_ref, atol=1e-5, rtol=1e-5)
    assert jnp.allclose(logsigma, ls_ref, atol=1e-5, rtol=1e-5)

    # Test 2: large ragged N -> multi-step grid + masked (unpadded) last block.
    x2 = jax.random.normal(k_x2, (1, 2050, input_dim), jnp.float32)
    mu2, ls2 = dblock_forward(x2, prepared_f32)
    jax.block_until_ready((mu2, ls2))
    mu2_ref, ls2_ref = dblock_reference(x2, params)
    assert jnp.allclose(mu2, mu2_ref, atol=1e-5, rtol=1e-5)
    assert jnp.allclose(ls2, ls2_ref, atol=1e-5, rtol=1e-5)

    # Test 3: bf16 x / weights (HBM-bandwidth path), f32 accumulation & gate.
    prepared_bf16 = prepare_dblock_params(params, compute_dtype=jnp.bfloat16)
    mu3, ls3 = dblock_forward(x.astype(jnp.bfloat16), prepared_bf16)
    jax.block_until_ready((mu3, ls3))
    assert jnp.allclose(mu3.astype(jnp.float32), mu_ref, atol=5e-2, rtol=5e-2)
    assert jnp.allclose(ls3.astype(jnp.float32), ls_ref, atol=5e-2, rtol=5e-2)

    print("KERNEL_OK")
</pallas_src>

<mosaic_0001>
module attributes {stable_mosaic.version = 11 : i64} {
  func.func @_dblock_kernel(%arg0: i32, %arg1: memref<16x32xf32, #tpu.memory_space<vmem>>, %arg2: memref<128x32xf32, #tpu.memory_space<vmem>>, %arg3: memref<128x1xf32, #tpu.memory_space<vmem>>, %arg4: memref<32x64xf32, #tpu.memory_space<vmem>>, %arg5: memref<32x1xf32, #tpu.memory_space<vmem>>, %arg6: memref<32x16xf32, #tpu.memory_space<vmem>>) attributes {dimension_semantics = [#tpu.dimension_semantics<parallel>], iteration_bounds = array<i64: 1>, scalar_prefetch = 0 : i64, scratch_operands = 0 : i64, tpu.core_type = #tpu.core_type<tc>, window_params = [{transform_indices = @transform_0, window_bounds = array<i64: 16, 32>}, {pipeline_mode = #tpu.pipeline_mode<synchronous>, transform_indices = @transform_1, window_bounds = array<i64: 128, 32>}, {pipeline_mode = #tpu.pipeline_mode<synchronous>, transform_indices = @transform_2, window_bounds = array<i64: 128, 1>}, {pipeline_mode = #tpu.pipeline_mode<synchronous>, transform_indices = @transform_3, window_bounds = array<i64: 32, 64>}, {pipeline_mode = #tpu.pipeline_mode<synchronous>, transform_indices = @transform_4, window_bounds = array<i64: 32, 1>}, {transform_indices = @transform_5, window_bounds = array<i64: 32, 16>}]} {
    %c0 = arith.constant 0 : index
    %c0_0 = arith.constant 0 : index
    %0 = vector.load %arg1[%c0, %c0_0] : memref<16x32xf32, #tpu.memory_space<vmem>>, vector<16x32xf32>
    %1 = tpu.transpose %0, [1, 0] : vector<16x32xf32> -> vector<32x16xf32>
    %c0_1 = arith.constant 0 : index
    %c0_2 = arith.constant 0 : index
    %2 = vector.load %arg2[%c0_1, %c0_2] : memref<128x32xf32, #tpu.memory_space<vmem>>, vector<128x32xf32>
    %cst = arith.constant dense<0.000000e+00> : vector<128x16xf32>
    %3 = tpu.matmul %2, %1, %cst {dimension_numbers = #tpu.dot_dimension_numbers<[1], [0], [0], [1], [0, 0, 1, 1], [], []>} : vector<128x32xf32>, vector<32x16xf32>, vector<128x16xf32> -> vector<128x16xf32>
    %c0_3 = arith.constant 0 : index
    %c0_4 = arith.constant 0 : index
    %4 = vector.load %arg3[%c0_3, %c0_4] : memref<128x1xf32, #tpu.memory_space<vmem>>, vector<128x1xf32>
    %5 = vector.broadcast %4 : vector<128x1xf32> to vector<128x16xf32>
    %6 = arith.addf %3, %5 : vector<128x16xf32>
    %7 = math.tanh %6 : vector<128x16xf32>
    %8 = vector.extract_strided_slice %7 {offsets = [0, 0], sizes = [64, 16], strides = [1, 1]} : vector<128x16xf32> to vector<64x16xf32>
    %9 = vector.extract_strided_slice %7 {offsets = [64, 0], sizes = [64, 16], strides = [1, 1]} : vector<128x16xf32> to vector<64x16xf32>
    %cst_5 = arith.constant 5.000000e-01 : f32
    %10 = vector.broadcast %cst_5 : f32 to vector<64x16xf32>
    %11 = arith.mulf %10, %9 : vector<64x16xf32>
    %cst_6 = arith.constant 5.000000e-01 : f32
    %12 = vector.broadcast %cst_6 : f32 to vector<64x16xf32>
    %13 = arith.addf %11, %12 : vector<64x16xf32>
    %14 = arith.mulf %8, %13 : vector<64x16xf32>
    %c0_7 = arith.constant 0 : index
    %c0_8 = arith.constant 0 : index
    %15 = vector.load %arg4[%c0_7, %c0_8] : memref<32x64xf32, #tpu.memory_space<vmem>>, vector<32x64xf32>
    %cst_9 = arith.constant dense<0.000000e+00> : vector<32x16xf32>
    %16 = tpu.matmul %15, %14, %cst_9 {dimension_numbers = #tpu.dot_dimension_numbers<[1], [0], [0], [1], [0, 0, 1, 1], [], []>} : vector<32x64xf32>, vector<64x16xf32>, vector<32x16xf32> -> vector<32x16xf32>
    %c0_10 = arith.constant 0 : index
    %c0_11 = arith.constant 0 : index
    %17 = vector.load %arg5[%c0_10, %c0_11] : memref<32x1xf32, #tpu.memory_space<vmem>>, vector<32x1xf32>
    %18 = vector.broadcast %17 : vector<32x1xf32> to vector<32x16xf32>
    %19 = arith.addf %16, %18 : vector<32x16xf32>
    %c0_12 = arith.constant 0 : index
    %c0_13 = arith.constant 0 : index
    %20 = vector.load %arg6[%c0_12, %c0_13] : memref<32x16xf32, #tpu.memory_space<vmem>>, vector<32x16xf32>
    tpu.vector_store %arg6[%c0_12, %c0_13], %19 {strides = array<i32>} : memref<32x16xf32, #tpu.memory_space<vmem>>, vector<32x16xf32>,
    return
  }
  func.func @transform_0(%arg0: i32) -> (i32, i32) {
    %c0_i32 = arith.constant 0 : i32
    %c0_i32_0 = arith.constant 0 : i32
    return %arg0, %c0_i32 : i32, i32
  }
  func.func @transform_1(%arg0: i32) -> (i32, i32) {
    %c0_i32 = arith.constant 0 : i32
    %c0_i32_0 = arith.constant 0 : i32
    %c0_i32_1 = arith.constant 0 : i32
    return %c0_i32, %c0_i32_0 : i32, i32
  }
  func.func @transform_2(%arg0: i32) -> (i32, i32) {
    %c0_i32 = arith.constant 0 : i32
    %c0_i32_0 = arith.constant 0 : i32
    %c0_i32_1 = arith.constant 0 : i32
    return %c0_i32, %c0_i32_0 : i32, i32
  }
  func.func @transform_3(%arg0: i32) -> (i32, i32) {
    %c0_i32 = arith.constant 0 : i32
    %c0_i32_0 = arith.constant 0 : i32
    %c0_i32_1 = arith.constant 0 : i32
    return %c0_i32, %c0_i32_0 : i32, i32
  }
  func.func @transform_4(%arg0: i32) -> (i32, i32) {
    %c0_i32 = arith.constant 0 : i32
    %c0_i32_0 = arith.constant 0 : i32
    %c0_i32_1 = arith.constant 0 : i32
    return %c0_i32, %c0_i32_0 : i32, i32
  }
  func.func @transform_5(%arg0: i32) -> (i32, i32) {
    %c0_i32 = arith.constant 0 : i32
    %c0_i32_0 = arith.constant 0 : i32
    return %c0_i32, %arg0 : i32, i32
  }
}

</mosaic_0001>

<bundles_post_ra>
// kernel: dblock_forward.1
= control target key start
LH: loop header
LB: loop body
LE: loop exit
PB: predicated region body
PF: predicated region fallthrough
CT: control target
= control target key end

     0   :  { %vm134_vm0 = vcmask 261120   ;;  %v668_v2 = vmov 0   ;;  %vm402_vm2 = vcmask 523264   ;;  %vm500_vm3 = vcmask 130048   ;;  %s859_s0 = inlined_call_operand.vmem [shape: f32[16,32], index: 0, kind: input, shape index: {}]   ;;  %s860_s1 = inlined_call_operand.vmem [shape: f32[128,32], index: 1, kind: input, shape index: {}]   ;;  %s861_s2 = inlined_call_operand.vmem [shape: f32[128,1], index: 2, kind: input, shape index: {}]   ;;  %s862_s4 = inlined_call_operand.vmem [shape: f32[32,1], index: 4, kind: input, shape index: {}]   ;;  %s863_s3 = inlined_call_operand.vmem [shape: f32[32,64], index: 3, kind: input, shape index: {}]   ;;  %s864_s5 = inlined_call_operand.vmem [shape: f32[32,16], index: 5, kind: output, shape index: {}]  }
   0x1   :  { %v20_v0 = vld [vmem:[%s859_s0] sm:$0xff]  ;;  %v21_v1 = vld [vmem:[%s859_s0 + $0x8] sm:$0xff]  ;;  %vm612_vm1 = vmpackc.low %vm134_vm0, %vm134_vm0  ;;  %635 = vset.pattern.permute.xlu1 %v668_v2  ;;  %634 = vset.pattern.permute.xlu0 %v668_v2 }
   0x2   :  { %v611_v3 = vpack.c.bf16 %v21_v1, %v20_v0  ;;  %v22_v4 = vld [vmem:[%s860_s1] sm:$0xff]  ;;  %v23_v7 = vld [vmem:[%s860_s1 + $0x8] sm:$0xff]  ;;  %v24_v9 = vld [vmem:[%s860_s1 + $0x10] sm:$0xff] }
   0x3   :  { %565 = vmatprep.mubr.msk.f32.mxu0 %vm134_vm0, %v22_v4  ;;  %v46_v5 = vld [vmem:[%s861_s2 + $0x40] sm:$0xff]  ;;  %v47_v8 = vld [vmem:[%s861_s2 + $0x48] sm:$0xff]  ;;  %v25_v11 = vld [vmem:[%s860_s1 + $0x18] sm:$0xff] }
   0x4   :  { %613 = vmatprep.subr.msk.bf16.mxu0 %vm612_vm1, %v611_v3  ;;  %v38_v6 = vld [vmem:[%s861_s2] sm:$0xff]  ;;  %96 = vperm.xlu0 %634, %v46_v5   ;;  %v39_v10 = vld [vmem:[%s861_s2 + $0x8] sm:$0xff]  ;;  %v48_v12 = vld [vmem:[%s861_s2 + $0x50] sm:$0xff] }
   0x5   :  { %616 = vmatpush3.bf16.xpose.msk.msra.mxu0 %vm612_vm1, %v611_v3  ;;  %56 = vperm.xlu1 %635, %v38_v6   ;;  %v26_v13 = vld [vmem:[%s860_s1 + $0x20] sm:$0xff]  ;;  %v49_v14 = vld [vmem:[%s861_s2 + $0x58] sm:$0xff]  ;;  %v27_v15 = vld [vmem:[%s860_s1 + $0x28] sm:$0xff] }
   0x6   :  { %v40_v16 = vld [vmem:[%s861_s2 + $0x10] sm:$0xff]  ;;  %v41_v18 = vld [vmem:[%s861_s2 + $0x18] sm:$0xff]  ;;  %v50_v20 = vld [vmem:[%s861_s2 + $0x60] sm:$0xff] }
   0x7   :  { %v28_v17 = vld [vmem:[%s860_s1 + $0x30] sm:$0xff]  ;;  %v29_v19 = vld [vmem:[%s860_s1 + $0x38] sm:$0xff]  ;;  %v30_v21 = vld [vmem:[%s860_s1 + $0x40] sm:$0xff] }
   0x8   :  { %101 = vperm.xlu0 %634, %v47_v8   ;;  %v51_v22 = vld [vmem:[%s861_s2 + $0x68] sm:$0xff]  ;;  %v42_v24 = vld [vmem:[%s861_s2 + $0x20] sm:$0xff]  ;;  %v32_v25 = vld [vmem:[%s860_s1 + $0x50] sm:$0xff] }
   0x9   :  { %61 = vperm.xlu1 %635, %v39_v10   ;;  %v31_v23 = vld [vmem:[%s860_s1 + $0x48] sm:$0xff]  ;;  %v33_v27 = vld [vmem:[%s860_s1 + $0x58] sm:$0xff]  ;;  %v52_v28 = vld [vmem:[%s861_s2 + $0x70] sm:$0xff] }
   0xa   :  { %v43_v26 = vld [vmem:[%s861_s2 + $0x28] sm:$0xff]  ;;  %v34_v29 = vld [vmem:[%s860_s1 + $0x60] sm:$0xff]  ;;  %v53_v30 = vld [vmem:[%s861_s2 + $0x78] sm:$0xff] }
   0xb   :  { %v35_v31 = vld [vmem:[%s860_s1 + $0x68] sm:$0xff]  ;;  %v44_v32 = vld [vmem:[%s861_s2 + $0x30] sm:$0xff]  ;;  %v45_v34 = vld [vmem:[%s861_s2 + $0x38] sm:$0xff] }
   0xc   :  { %566 = vmatmul.mubr.msk.f32.vlgmr.msra.gmra.mrb[0].mxu0 %vm134_vm0, %v23_v7  ;;  %106 = vperm.xlu0 %634, %v48_v12   ;;  %v36_v33 = vld [vmem:[%s860_s1 + $0x70] sm:$0xff]  ;;  %v37_v35 = vld [vmem:[%s860_s1 + $0x78] sm:$0xff]  ;;  %v378_v36 = vld [vmem:[%s862_s4] sm:$0xff] }
   0xd   :  { %568 = vmatprep.mubr.msk.f32.mxu0 %vm134_vm0, %v24_v9  ;;  %111 = vperm.xlu1 %635, %v49_v14   ;;  %v379_v37 = vld [vmem:[%s862_s4 + $0x8] sm:$0xff]  ;;  %v380_v38 = vld [vmem:[%s862_s4 + $0x10] sm:$0xff]  ;;  %v381_v39 = vld [vmem:[%s862_s4 + $0x18] sm:$0xff] }
   0xe   :  { %v374_v40 = vld [vmem:[%s863_s3] sm:$0xff] }
   0xf   :  { %605 = vmatprep.mubr.msk.f32.mxu1 %vm402_vm2, %v374_v40 }
  0x10   :  { %569 = vmatmul.mubr.msk.f32.gmra.mrb[2].mxu0 %vm134_vm0, %v25_v11  ;;  %66 = vperm.xlu0 %634, %v40_v16  }
  0x11   :  { %571 = vmatprep.mubr.msk.f32.mxu0 %vm134_vm0, %v26_v13  ;;  %71 = vperm.xlu1 %635, %v41_v18  }
  0x14   :  { %572 = vmatmul.mubr.msk.f32.gmra.mrb[4].mxu0 %vm134_vm0, %v27_v15  ;;  %116 = vperm.xlu0 %634, %v50_v20  }
  0x15   :  { %574 = vmatprep.mubr.msk.f32.mxu0 %vm134_vm0, %v28_v17  ;;  %121 = vperm.xlu1 %635, %v51_v22  }
  0x18   :  { %575 = vmatmul.mubr.msk.f32.gmra.mrb[6].mxu0 %vm134_vm0, %v29_v19  ;;  %76 = vperm.xlu0 %634, %v42_v24  }
  0x19   :  { %577 = vmatprep.mubr.msk.f32.mxu0 %vm134_vm0, %v30_v21  ;;  %81 = vperm.xlu1 %635, %v43_v26  }
  0x1c   :  { %578 = vmatmul.mubr.msk.f32.gmra.mrb[8].mxu0 %vm134_vm0, %v31_v23  ;;  %126 = vperm.xlu0 %634, %v52_v28  }
  0x1d   :  { %580 = vmatprep.mubr.msk.f32.mxu0 %vm134_vm0, %v32_v25  ;;  %131 = vperm.xlu1 %635, %v53_v30  }
  0x20   :  { %581 = vmatmul.mubr.msk.f32.gmra.mrb[10].mxu0 %vm134_vm0, %v33_v27  ;;  %86 = vperm.xlu0 %634, %v44_v32  }
  0x21   :  { %583 = vmatprep.mubr.msk.f32.mxu0 %vm134_vm0, %v34_v29  ;;  %91 = vperm.xlu1 %635, %v45_v34  }
  0x24   :  { %584 = vmatmul.mubr.msk.f32.gmra.mrb[12].mxu0 %vm134_vm0, %v35_v31  ;;  %384 = vperm.xlu0 %634, %v378_v36  }
  0x25   :  { %586 = vmatprep.mubr.msk.f32.mxu0 %vm134_vm0, %v36_v33  ;;  %389 = vperm.xlu1 %635, %v379_v37  }
  0x28   :  { %587 = vmatmul.mubr.msk.f32.gmra.mrb[14].mxu0 %vm134_vm0, %v37_v35  ;;  %394 = vperm.xlu0 %634, %v380_v38  }
  0x29   :  { %399 = vperm.xlu1 %635, %v381_v39  }
  0x83   :  { %v97_v42 = vpop.permute.xlu0 %96 }
  0x84   :  { %v57_v41 = vpop.permute.xlu1 %56 }
  0x87   :  { %v102_v44 = vpop.permute.xlu0 %101 }
  0x88   :  { %v62_v43 = vpop.permute.xlu1 %61 }
  0x8b   :  { %v107_v47 = vpop.permute.xlu0 %106 }
  0x8c   :  { %v112_v45 = vpop.permute.xlu1 %111 }
  0x8f   :  { %v67_v52 = vpop.permute.xlu0 %66 }
  0x90   :  { %v72_v51 = vpop.permute.xlu1 %71 }
  0x93   :  { %v117_v57 = vpop.permute.xlu0 %116 }
  0x94   :  { %v122_v55 = vpop.permute.xlu1 %121 }
  0x97   :  { %v77_v2 = vpop.permute.xlu0 %76 }
  0x98   :  { %v82_v63 = vpop.permute.xlu1 %81 }
  0x9b   :  { %v127_v11 = vpop.permute.xlu0 %126 }
  0x9c   :  { %v132_v9 = vpop.permute.xlu1 %131 }
  0x9f   :  { %v87_v26 = vpop.permute.xlu0 %86 }
  0xa0   :  { %v92_v22 = vpop.permute.xlu1 %91 }
  0xdf   :  { %v567_v46 = vpop.f32.mrb[0].mxu0 }
  0xe0   :  { %v255_v48 = vpop.f32.mrb[1].mxu0  ;;  %v261_v60 = vadd.f32 %v567_v46, %v62_v43 }
  0xe1   :  { %v256_v0 = vadd.f32 %v255_v48, %v57_v41 }
  0xe3   :  { %v570_v49 = vpop.f32.mrb[2].mxu0 }
  0xe4   :  { %v265_v50 = vpop.f32.mrb[3].mxu0  ;;  %v271_v4 = vadd.f32 %v570_v49, %v72_v51 }
  0xe5   :  { %v266_v7 = vadd.f32 %v265_v50, %v67_v52 }
  0xe7   :  { %v573_v53 = vpop.f32.mrb[4].mxu0 }
  0xe8   :  { %v275_v54 = vpop.f32.mrb[5].mxu0  ;;  %v281_v12 = vadd.f32 %v573_v53, %v82_v63 }
  0xe9   :  { %v276_v15 = vadd.f32 %v275_v54, %v77_v2 }
  0xeb   :  { %v576_v56 = vpop.f32.mrb[6].mxu0 }
  0xec   :  { %v285_v58 = vpop.f32.mrb[7].mxu0  ;;  %v291_v27 = vadd.f32 %v576_v56, %v92_v22 }
  0xed   :  { %v286_v30 = vadd.f32 %v285_v58, %v87_v26 }
  0xef   :  { %v579_v59 = vpop.f32.mrb[8].mxu0 }
  0xf0   :  { %v301_v61 = vadd.f32 %v579_v59, %v102_v44  ;;  %v295_v62 = vpop.f32.mrb[9].mxu0 }
  0xf1   :  { %v296_v1 = vadd.f32 %v295_v62, %v97_v42 }
  0xf2   :  { %636 = vtanh.f32 %v301_v61 }
  0xf3   :  { %638 = vtanh.f32 %v296_v1  ;;  %v582_v3 = vpop.f32.mrb[10].mxu0 }
  0xf4   :  { %640 = vtanh.f32 %v261_v60  ;;  %v311_v5 = vadd.f32 %v582_v3, %v112_v45  ;;  %v305_v6 = vpop.f32.mrb[11].mxu0 }
  0xf5   :  { %642 = vtanh.f32 %v256_v0  ;;  %v306_v8 = vadd.f32 %v305_v6, %v107_v47  ;;  %v376_v6 = vld [vmem:[%s863_s3 + $0x10] sm:$0xff] }
  0xf6   :  { %644 = vtanh.f32 %v311_v5  ;;  %v375_v5 = vld [vmem:[%s863_s3 + $0x8] sm:$0xff] }
  0xf7   :  { %646 = vtanh.f32 %v306_v8  ;;  %v585_v10 = vpop.f32.mrb[12].mxu0  ;;  %v390_v8 = vpop.permute.xlu1 %389 }
  0xf8   :  { %648 = vtanh.f32 %v271_v4  ;;  %v321_v13 = vadd.f32 %v585_v10, %v122_v55  ;;  %v315_v14 = vpop.f32.mrb[13].mxu0 }
  0xf9   :  { %650 = vtanh.f32 %v266_v7  ;;  %v316_v16 = vadd.f32 %v315_v14, %v117_v57  ;;  %v377_v7 = vld [vmem:[%s863_s3 + $0x18] sm:$0xff] }
  0xfa   :  { %652 = vtanh.f32 %v321_v13 }
  0xfb   :  { %654 = vtanh.f32 %v316_v16  ;;  %v588_v17 = vpop.f32.mrb[14].mxu0  ;;  %v400_v14 = vpop.permute.xlu1 %399 }
  0xfc   :  { %v637_v18 = vpop.eup %636  ;;  %656 = vtanh.f32 %v281_v12  ;;  %v331_v19 = vadd.f32 %v588_v17, %v132_v9  ;;  %v325_v20 = vpop.f32.mrb[15].mxu0 }
  0xfd   :  { %v639_v21 = vpop.eup %638  ;;  %658 = vtanh.f32 %v276_v15  ;;  %v351_v23 = vmul.f32 0.5, %v637_v18  ;;  %v326_v24 = vadd.f32 %v325_v20, %v127_v11  ;;  %v385_v9 = vpop.permute.xlu0 %384 }
  0xfe   :  { %v641_v25 = vpop.eup %640  ;;  %v350_v28 = vmul.f32 0.5, %v639_v21  ;;  %660 = vtanh.f32 %v331_v19 }
  0xff   :  { %v643_v29 = vpop.eup %642  ;;  %v359_v31 = vadd.f32 0.5, %v351_v23  ;;  %662 = vtanh.f32 %v326_v24 }
 0x100   :  { %v645_v32 = vpop.eup %644  ;;  %v358_v33 = vadd.f32 0.5, %v350_v28  ;;  %664 = vtanh.f32 %v291_v27 }
 0x101   :  { %v647_v34 = vpop.eup %646  ;;  %v353_v35 = vmul.f32 0.5, %v645_v32  ;;  %v367_v36 = vmul.f32 %v641_v25, %v359_v31  ;;  %666 = vtanh.f32 %v286_v30  ;;  %v395_v16 = vpop.permute.xlu0 %394 }
 0x102   :  { %v649_v37 = vpop.eup %648  ;;  %v352_v38 = vmul.f32 0.5, %v647_v34  ;;  %v366_v39 = vmul.f32 %v643_v29, %v358_v33 }
 0x103   :  { %v651_v40 = vpop.eup %650  ;;  %v361_v41 = vadd.f32 0.5, %v353_v35 }
 0x104   :  { %v653_v42 = vpop.eup %652  ;;  %v360_v43 = vadd.f32 0.5, %v352_v38  ;;  %v617_v44 = vpack.c.bf16 %v367_v36, %v366_v39 }
 0x105   :  { %v655_v45 = vpop.eup %654  ;;  %v355_v46 = vmul.f32 0.5, %v653_v42  ;;  %v369_v47 = vmul.f32 %v649_v37, %v361_v41 }
 0x106   :  { %v657_v48 = vpop.eup %656  ;;  %v354_v49 = vmul.f32 0.5, %v655_v45  ;;  %618 = vmatprep.subr.bf16.mxu1 %v617_v44  ;;  %v368_v50 = vmul.f32 %v651_v40, %v360_v43 }
 0x107   :  { %v659_v51 = vpop.eup %658  ;;  %v363_v52 = vadd.f32 0.5, %v355_v46  ;;  %620 = vmatpush3.bf16.msra.mxu1 %v617_v44 }
 0x108   :  { %v661_v53 = vpop.eup %660  ;;  %v362_v54 = vadd.f32 0.5, %v354_v49  ;;  %v621_v55 = vpack.c.bf16 %v369_v47, %v368_v50 }
 0x109   :  { %v663_v56 = vpop.eup %662  ;;  %v357_v57 = vmul.f32 0.5, %v661_v53  ;;  %v371_v58 = vmul.f32 %v657_v48, %v363_v52 }
 0x10a   :  { %v356_v59 = vmul.f32 0.5, %v663_v56  ;;  %622 = vmatprep.subr.bf16.mxu1 %v621_v55  ;;  %v370_v60 = vmul.f32 %v659_v51, %v362_v54  ;;  %v665_v62 = vpop.eup %664 }
 0x10b   :  { %v365_v61 = vadd.f32 0.5, %v357_v57  ;;  %624 = vmatpush3.bf16.msra.mxu1 %v621_v55  ;;  %v667_v1 = vpop.eup %666 }
 0x10c   :  { %v364_v63 = vadd.f32 0.5, %v356_v59  ;;  %v625_v0 = vpack.c.bf16 %v371_v58, %v370_v60 }
 0x10d   :  { %v373_v2 = vmul.f32 %v665_v62, %v365_v61 }
 0x10e   :  { %626 = vmatprep.subr.bf16.mxu1 %v625_v0  ;;  %v372_v3 = vmul.f32 %v667_v1, %v364_v63 }
 0x10f   :  { %628 = vmatpush3.bf16.msra.mxu1 %v625_v0 }
 0x110   :  { %v629_v4 = vpack.c.bf16 %v373_v2, %v372_v3 }
 0x112   :  { %630 = vmatprep.subr.bf16.mxu1 %v629_v4 }
 0x113   :  { %632 = vmatpush3.bf16.msra.mxu1 %v629_v4 }
 0x116   :  { %606 = vmatmul.mubr.msk.f32.vlgmr.msra.gmra.mrb[0].mxu1 %vm402_vm2, %v375_v5 }
 0x117   :  { %608 = vmatprep.mubr.msk.f32.mxu1 %vm402_vm2, %v376_v6 }
 0x11a   :  { %609 = vmatmul.mubr.msk.f32.gmra.mrb[2].mxu1 %vm402_vm2, %v377_v7 }
 0x1e9   :  { %v607_v10 = vpop.f32.mrb[0].mxu1 }
 0x1ea   :  { %v487_v11 = vadd.f32 %v607_v10, %v390_v8  ;;  %v481_v12 = vpop.f32.mrb[1].mxu1 }
 0x1eb   :  { %v482_v13 = vadd.f32 %v481_v12, %v385_v9 }
 0x1ec   :  { %502 = vst.msk [vmem:[%s864_s5 + $0x8] sm:$0xff] %vm500_vm3, %v487_v11 }
 0x1ed   :  { %501 = vst.msk [vmem:[%s864_s5] sm:$0xff] %vm500_vm3, %v482_v13  ;;  %v610_v15 = vpop.f32.mrb[2].mxu1 }
 0x1ee   :  { %v497_v17 = vadd.f32 %v610_v15, %v400_v14  ;;  %v491_v18 = vpop.f32.mrb[3].mxu1 }
 0x1ef   :  { %v492_v19 = vadd.f32 %v491_v18, %v395_v16 }
 0x1f0   :  { %504 = vst.msk [vmem:[%s864_s5 + $0x18] sm:$0xff] %vm500_vm3, %v497_v17 }
 0x1f1   :  { %503 = vst.msk [vmem:[%s864_s5 + $0x10] sm:$0xff] %vm500_vm3, %v492_v19 }

</bundles_post_ra>
